<compile_context>
chip_gen: v7x
topology: tpu7x:2x2x1
jax: 0.10.0
libtpu: 0.0.40
codegen_flags: <defaults>
</compile_context>

<pallas_src>
import functools

import jax
import jax.numpy as jnp
from jax import lax
from jax.experimental import pallas as pl
from jax.experimental.pallas import tpu as pltpu

IN_FEATURES = 117
HIDDEN = 50
OUT_FEATURES = 1

HID_PAD = 128       # hidden 50 -> 128 lanes (weights only; exact)
MAX_BLOCK_B = 2048  # batch tile (rows); ~1 MiB per x tile, trivial in VMEM


def _round_up(n, m):
    return ((n + m - 1) // m) * m


def _choose_tile(B, block_b):
    """Pick (tile_rows, padded_batch).

    Small batches: a single full tile (block == full array, so only the
    sublane multiple-of-8 rule applies).  Larger batches: tiles are a
    multiple of 128 rows (needed for the lane-dense (1, tb) output block)
    and sized so the grid has >=2 steps (v7x megacore split).
    """
    if B <= 128:
        tb = _round_up(max(B, 1), 8)
        return tb, tb
    half = _round_up(-(-B // 2), 128)          # ceil(B/2) rounded up to 128
    tb = max(128, min(_round_up(block_b, 128), half))
    b_pad = _round_up(B, tb)
    return tb, b_pad


def _mlp_kernel(x_ref, w1_ref, b1_ref, w2row_ref, b2_ref, o_ref):
    # Layer 1: h = relu(x @ W1 + b1)  -> (tb, 128), f32 accumulate on the MXU.
    h = jnp.dot(x_ref[...], w1_ref[...], preferred_element_type=jnp.float32)
    h = jnp.maximum(h + b1_ref[...], 0.0)
    # Layer 2 (N=1): compute lane-dense (1, tb) = w2row(1,128) . h(tb,128)^T
    # on the MXU, so the output writeback is unmasked full-lane stores.
    y = lax.dot_general(
        w2row_ref[...], h,
        dimension_numbers=(((1,), (1,)), ((), ())),
        preferred_element_type=jnp.float32)
    o_ref[...] = (y + b2_ref[0, 0]).astype(o_ref.dtype)


@functools.partial(jax.jit, static_argnames=("block_b",))
def net_forward(x, w1, b1, w2, b2, *, block_b=MAX_BLOCK_B):
    """x: (B, 117) f32; w1: (117, 50); b1: (1, 50); w2: (50, 1); b2: (1, 1)."""
    B = x.shape[0]
    dtype = x.dtype

    tb, b_pad = _choose_tile(B, block_b)
    grid_steps = b_pad // tb

    # Batch padding only (no feature-dim copy of x).
    x_p = x if b_pad == B else jnp.pad(x, ((0, b_pad - B), (0, 0)))

    # Small resident weights, zero-padded 50 -> 128 hidden lanes (exact).
    w1_p = jnp.pad(w1.astype(dtype), ((0, 0), (0, HID_PAD - HIDDEN)))
    b1_p = jnp.pad(b1.astype(dtype), ((0, 0), (0, HID_PAD - HIDDEN)))
    w2_row = jnp.pad(w2[:, 0].astype(dtype), (0, HID_PAD - HIDDEN)).reshape(1, HID_PAD)
    b2_s = b2.reshape(1, 1).astype(dtype)

    cost = pl.CostEstimate(
        flops=2 * b_pad * (IN_FEATURES * HID_PAD + HID_PAD),
        transcendentals=0,
        bytes_accessed=4 * (b_pad * IN_FEATURES                  # x streamed in
                            + b_pad                               # y streamed out
                            + grid_steps * (IN_FEATURES * HID_PAD # resident weights
                                            + 2 * HID_PAD + 1)),
    )

    out_pad = pl.pallas_call(
        _mlp_kernel,
        out_shape=jax.ShapeDtypeStruct((1, b_pad), dtype),
        grid=(grid_steps,),
        in_specs=[
            pl.BlockSpec((tb, IN_FEATURES), lambda i: (i, 0)),       # x tile (unpadded lanes)
            pl.BlockSpec((IN_FEATURES, HID_PAD), lambda i: (0, 0)),  # W1 (resident)
            pl.BlockSpec((1, HID_PAD), lambda i: (0, 0)),            # b1
            pl.BlockSpec((1, HID_PAD), lambda i: (0, 0)),            # W2 as a row
            pl.BlockSpec(memory_space=pltpu.MemorySpace.SMEM),       # b2 scalar
        ],
        out_specs=pl.BlockSpec((1, tb), lambda i: (0, i)),           # lane-dense output
        compiler_params=pltpu.CompilerParams(
            dimension_semantics=("parallel",)),
        cost_estimate=cost,
    )(x_p, w1_p, b1_p, w2_row, b2_s)

    # (1, b_pad) lane-dense slab -> public (B, 1) shape.
    return out_pad[0, :B].reshape(B, OUT_FEATURES)


def init_params(key):
    """PyTorch nn.Linear default init: U[-1/sqrt(fan_in), +1/sqrt(fan_in)]."""
    k1, k2, k3, k4 = jax.random.split(key, 4)
    bound1 = 1.0 / jnp.sqrt(jnp.float32(IN_FEATURES))
    bound2 = 1.0 / jnp.sqrt(jnp.float32(HIDDEN))
    w1 = jax.random.uniform(k1, (IN_FEATURES, HIDDEN), jnp.float32, -bound1, bound1)
    b1 = jax.random.uniform(k2, (1, HIDDEN), jnp.float32, -bound1, bound1)
    w2 = jax.random.uniform(k3, (HIDDEN, OUT_FEATURES), jnp.float32, -bound2, bound2)
    b2 = jax.random.uniform(k4, (1, OUT_FEATURES), jnp.float32, -bound2, bound2)
    return w1, b1, w2, b2


def _reference(x, w1, b1, w2, b2):
    return jnp.maximum(x @ w1 + b1, 0.0) @ w2 + b2


if __name__ == "__main__":
    key = jax.random.PRNGKey(0)
    pkey, xkey, xkey2 = jax.random.split(key, 3)
    w1, b1, w2, b2 = init_params(pkey)

    # Small batch: single tile, block == full array.
    B = 8
    x = jax.random.normal(xkey, (B, IN_FEATURES), jnp.float32)
    y = jax.block_until_ready(net_forward(x, w1, b1, w2, b2))
    y_ref = _reference(x, w1, b1, w2, b2)
    assert y.shape == (B, OUT_FEATURES)
    assert jnp.allclose(y, y_ref, atol=1e-5, rtol=1e-5)

    # Batch that exercises batch padding + a multi-step ("parallel") grid.
    B2 = 300
    x2 = jax.random.normal(xkey2, (B2, IN_FEATURES), jnp.float32)
    y2 = jax.block_until_ready(net_forward(x2, w1, b1, w2, b2))
    y2_ref = _reference(x2, w1, b1, w2, b2)
    assert y2.shape == (B2, OUT_FEATURES)
    assert jnp.allclose(y2, y2_ref, atol=1e-5, rtol=1e-5)

    print("KERNEL_OK")
</pallas_src>

<mosaic_0001>
module attributes {stable_mosaic.version = 11 : i64} {
  func.func @_mlp_kernel(%arg0: i32, %arg1: memref<8x117xf32, #tpu.memory_space<vmem>>, %arg2: memref<117x128xf32, #tpu.memory_space<vmem>>, %arg3: memref<1x128xf32, #tpu.memory_space<vmem>>, %arg4: memref<1x128xf32, #tpu.memory_space<vmem>>, %arg5: memref<1x1xf32, #tpu.memory_space<smem>>, %arg6: memref<1x8xf32, #tpu.memory_space<vmem>>) attributes {dimension_semantics = [#tpu.dimension_semantics<parallel>], iteration_bounds = array<i64: 1>, scalar_prefetch = 0 : i64, scratch_operands = 0 : i64, tpu.core_type = #tpu.core_type<tc>, window_params = [{transform_indices = @transform_0, window_bounds = array<i64: 8, 117>}, {pipeline_mode = #tpu.pipeline_mode<synchronous>, transform_indices = @transform_1, window_bounds = array<i64: 117, 128>}, {pipeline_mode = #tpu.pipeline_mode<synchronous>, transform_indices = @transform_2, window_bounds = array<i64: 1, 128>}, {pipeline_mode = #tpu.pipeline_mode<synchronous>, transform_indices = @transform_3, window_bounds = array<i64: 1, 128>}, {transform_indices = @transform_4, window_bounds = array<i64: 1, 1>}, {transform_indices = @transform_5, window_bounds = array<i64: 1, 8>}]} {
    %c0 = arith.constant 0 : index
    %c0_0 = arith.constant 0 : index
    %0 = vector.load %arg1[%c0, %c0_0] : memref<8x117xf32, #tpu.memory_space<vmem>>, vector<8x117xf32>
    %c0_1 = arith.constant 0 : index
    %c0_2 = arith.constant 0 : index
    %1 = vector.load %arg2[%c0_1, %c0_2] : memref<117x128xf32, #tpu.memory_space<vmem>>, vector<117x128xf32>
    %cst = arith.constant dense<0.000000e+00> : vector<8x128xf32>
    %2 = tpu.matmul %0, %1, %cst {dimension_numbers = #tpu.dot_dimension_numbers<[1], [0], [0], [1], [0, 0, 1, 1], [], []>} : vector<8x117xf32>, vector<117x128xf32>, vector<8x128xf32> -> vector<8x128xf32>
    %c0_3 = arith.constant 0 : index
    %c0_4 = arith.constant 0 : index
    %3 = vector.load %arg3[%c0_3, %c0_4] : memref<1x128xf32, #tpu.memory_space<vmem>>, vector<1x128xf32>
    %4 = vector.broadcast %3 : vector<1x128xf32> to vector<8x128xf32>
    %5 = arith.addf %2, %4 : vector<8x128xf32>
    %cst_5 = arith.constant 0.000000e+00 : f32
    %6 = vector.broadcast %cst_5 : f32 to vector<8x128xf32>
    %7 = arith.maximumf %5, %6 : vector<8x128xf32>
    %c0_6 = arith.constant 0 : index
    %c0_7 = arith.constant 0 : index
    %8 = vector.load %arg4[%c0_6, %c0_7] : memref<1x128xf32, #tpu.memory_space<vmem>>, vector<1x128xf32>
    %cst_8 = arith.constant dense<0.000000e+00> : vector<1x8xf32>
    %9 = tpu.matmul %8, %7, %cst_8 {dimension_numbers = #tpu.dot_dimension_numbers<[1], [1], [0], [0], [0, 0, 1, 0], [], []>} : vector<1x128xf32>, vector<8x128xf32>, vector<1x8xf32> -> vector<1x8xf32>
    %c0_9 = arith.constant 0 : index
    %c0_10 = arith.constant 0 : index
    %10 = memref.load %arg5[%c0_9, %c0_10] : memref<1x1xf32, #tpu.memory_space<smem>>
    %11 = vector.broadcast %10 : f32 to vector<1x8xf32>
    %12 = arith.addf %9, %11 : vector<1x8xf32>
    %c0_11 = arith.constant 0 : index
    %c0_12 = arith.constant 0 : index
    %13 = vector.load %arg6[%c0_11, %c0_12] : memref<1x8xf32, #tpu.memory_space<vmem>>, vector<1x8xf32>
    tpu.vector_store %arg6[%c0_11, %c0_12], %12 {strides = array<i32>} : memref<1x8xf32, #tpu.memory_space<vmem>>, vector<1x8xf32>,
    return
  }
  func.func @transform_0(%arg0: i32) -> (i32, i32) {
    %c0_i32 = arith.constant 0 : i32
    %c0_i32_0 = arith.constant 0 : i32
    return %arg0, %c0_i32 : i32, i32
  }
  func.func @transform_1(%arg0: i32) -> (i32, i32) {
    %c0_i32 = arith.constant 0 : i32
    %c0_i32_0 = arith.constant 0 : i32
    %c0_i32_1 = arith.constant 0 : i32
    return %c0_i32, %c0_i32_0 : i32, i32
  }
  func.func @transform_2(%arg0: i32) -> (i32, i32) {
    %c0_i32 = arith.constant 0 : i32
    %c0_i32_0 = arith.constant 0 : i32
    %c0_i32_1 = arith.constant 0 : i32
    return %c0_i32, %c0_i32_0 : i32, i32
  }
  func.func @transform_3(%arg0: i32) -> (i32, i32) {
    %c0_i32 = arith.constant 0 : i32
    %c0_i32_0 = arith.constant 0 : i32
    %c0_i32_1 = arith.constant 0 : i32
    return %c0_i32, %c0_i32_0 : i32, i32
  }
  func.func @transform_4(%arg0: i32) -> (i32, i32) {
    %c0_i32 = arith.constant 0 : i32
    %c0_i32_0 = arith.constant 0 : i32
    %c0_i32_1 = arith.constant 0 : i32
    return %c0_i32, %c0_i32_0 : i32, i32
  }
  func.func @transform_5(%arg0: i32) -> (i32, i32) {
    %c0_i32 = arith.constant 0 : i32
    %c0_i32_0 = arith.constant 0 : i32
    return %c0_i32, %arg0 : i32, i32
  }
}

</mosaic_0001>

<bundles_post_ra>
// kernel: net_forward.1
= control target key start
LH: loop header
LB: loop body
LE: loop exit
PB: predicated region body
PF: predicated region fallthrough
CT: control target
= control target key end

     0   :  { %v321_v3 = vmov 0.0|0.0   ;;  %v322_v6 = vmov 0.0   ;;  %vm323_vm0 = vmmov 0   ;;  %s424_s0 = inlined_call_operand.vmem [shape: f32[8,117], index: 0, kind: input, shape index: {}]   ;;  %s425_s1 = inlined_call_operand.vmem [shape: f32[117,128], index: 1, kind: input, shape index: {}]   ;;  %s426_s2 = inlined_call_operand.vmem [shape: f32[1,128], index: 2, kind: input, shape index: {}]   ;;  %s427_s3 = inlined_call_operand.vmem [shape: f32[1,128], index: 3, kind: input, shape index: {}]   ;;  %s428_s4 = inlined_call_operand.<no memory space> [shape: f32[1,1], index: 4, kind: input, shape index: {}]   ;;  %s429_s5 = inlined_call_operand.hbm [shape: f32[1,8], index: 5, kind: output, shape index: {}]  }
   0x1   :  { %v23_v0 = vld [vmem:[%s425_s1] sm:$0xff]  ;;  %v24_v1 = vld [vmem:[%s425_s1 + $0x8] sm:$0xff]  ;;  %v25_v2 = vld [vmem:[%s425_s1 + $0x10] sm:$0xff]  ;;  %272 = vmatprep.subr.bf16.mxu0 %v321_v3  ;;  %267 = vmatprep.subr.mxu1 %v322_v6 }
   0x2   :  { %v273_v4 = vpack.c.bf16 %v24_v1, %v23_v0  ;;  %v26_v5 = vld [vmem:[%s425_s1 + $0x18] sm:$0xff]  ;;  %264 = vmatprep.mubr.msk.f32.mxu0 %vm323_vm0, %v322_v6  ;;  %269 = vmatprep.mubr.msk.f32.mxu1 %vm323_vm0, %v322_v6  ;;  %v27_v8 = vld [vmem:[%s425_s1 + $0x20] sm:$0xff]  ;;  %v28_v9 = vld [vmem:[%s425_s1 + $0x28] sm:$0xff] }
   0x3   :  { %v276_v7 = vpack.c.bf16 %v26_v5, %v25_v2 }
   0x4   :  { %274 = vmatpush3.bf16.msra.mxu0 %v273_v4 }
   0x5   :  { %275 = vmatprep.subr.bf16.mxu0 %v321_v3 }
   0x6   :  { %11 = vsyncpa [#allocation4], 0  ;;  %v279_v10 = vpack.c.bf16 %v28_v9, %v27_v8  ;;  %v29_v11 = vld [vmem:[%s425_s1 + $0x30] sm:$0xff]  ;;  %v30_v12 = vld [vmem:[%s425_s1 + $0x38] sm:$0xff]  ;;  %vm49_vm1 = vcmask 1044480   ;;  %vm45_vm2 = vcmask 957440   ;;  %v126_v31 = vstv %s428_s4 }
   0x7   :  { %v282_v13 = vpack.c.bf16 %v30_v12, %v29_v11  ;;  %v31_v14 = vld [vmem:[%s425_s1 + $0x40] sm:$0xff]  ;;  %v32_v15 = vld [vmem:[%s425_s1 + $0x48] sm:$0xff]  ;;  %v33_v17 = vld [vmem:[%s425_s1 + $0x50] sm:$0xff]  ;;  %vm197_vm3 = vcmask 57344  }
   0x8   :  { %277 = vmatpush3.bf16.msra.mxu0 %v276_v7  ;;  %v285_v16 = vpack.c.bf16 %v32_v15, %v31_v14  ;;  %v34_v18 = vld [vmem:[%s425_s1 + $0x58] sm:$0xff]  ;;  %v35_v20 = vld [vmem:[%s425_s1 + $0x60] sm:$0xff]  ;;  %v36_v21 = vld [vmem:[%s425_s1 + $0x68] sm:$0xff] }
   0x9   :  { %278 = vmatprep.subr.bf16.mxu0 %v321_v3  ;;  %v288_v19 = vpack.c.bf16 %v34_v18, %v33_v17  ;;  %v291_v22 = vpack.c.bf16 %v36_v21, %v35_v20  ;;  %v37_v23 = vld [vmem:[%s425_s1 + $0x70] sm:$0x1f]  ;;  %v22_v24 = vld [vmem:[%s424_s0] sm:$0xff]  ;;  %s324_s0 = smov [#allocation3]  }
   0xa   :  { %v213_v25 = vld [vmem:[%s426_s2] ss:$0 sm:$0xff]  ;;  %s205_s30 = sshll.u32 %s324_s0, 4  ;;  %s206_s30 = int_to_ptr.vmem [resolvable:$true] %s205_s30 }
   0xb   :  { %v124_v30 = vld [vmem:[%s427_s3] sm:$0x1]  ;;  %s297_s2 = scalar_lea.vmem %s206_s30, 16  ;;  %s301_s6 = scalar_lea.vmem %s206_s30, 32 }
   0xc   :  { %280 = vmatpush3.bf16.msra.mxu0 %v279_v10  ;;  %p298_p0 = scmp.ne.s32.totalorder %s206_s30, %s297_s2  ;;  %p302_p1 = scmp.lt.s32.totalorder %s206_s30, %s206_s30 }
   0xd   :  { %281 = vmatprep.subr.bf16.mxu0 %v321_v3  ;;  %p303_p2 = scmp.lt.s32.totalorder %s301_s6, %s297_s2 }
   0xf   :  { %p304_p3 = por %p303_p2, %p302_p1 }
  0x10   :  { %283 = vmatpush3.bf16.msra.mxu0 %v282_v13 }
  0x11   :  { %284 = vmatprep.subr.bf16.mxu0 %v321_v3  ;;  %p305_p4 = pnand %p304_p3, %p298_p0 }
  0x14   :  { %286 = vmatpush3.bf16.msra.mxu0 %v285_v16 }
  0x15   :  { %287 = vmatprep.subr.bf16.mxu0 %v321_v3 }
  0x18   :  { %289 = vmatpush3.bf16.msra.mxu0 %v288_v19 }
  0x19   :  { %290 = vmatprep.subr.bf16.mxu0 %v321_v3 }
  0x1c   :  { %292 = vmatpush3.bf16.msra.mxu0 %v291_v22 }
  0x1d   :  { %262 = vmatprep.subr.mxu0 %v322_v6 }
  0x20   :  { %263 = vmatpush3.msk.msra.mxu0 %vm49_vm1, %v37_v23 }
  0x21   :  { %265 = vmatmul.mubr.msk.f32.vlgmr.msra.gmra.mrb[0].mxu0 %vm45_vm2, %v22_v24 }
  0xf4   :  { %v119_v26 = vpop.f32.mrb[0].mxu0 }
  0xf5   :  { %v120_v27 = vadd.f32 %v213_v25, %v119_v26  ;;  %v266_v28 = vpop.f32.mrb[1].mxu0 }
  0xf7   :  { %v123_v29 = vmax.f32 %v120_v27, 0.0 }
  0xf9   :  { %268 = vmatpush3.xpose.msra.mxu1 %v123_v29 }
  0xfc   :  { %270 = vmatmul.mubr.f32.vlgmr.msra.gmra.mrb[0].mxu1 %v124_v30 }
 0x1cf   :  { %v193_v32 = vpop.f32.mrb[0].mxu1 }
 0x1d0   :  { %v194_v33 = vadd.f32 %v193_v32, %v126_v31  ;;  %v271_v34 = vpop.f32.mrb[1].mxu1 }
 0x1d2   :  { %198 = vst.msk [vmem:[#allocation3] sm:$0x1] %vm197_vm3, %v194_v33 }
 0x1d3   :  { %308 = shalt.err (!%p305_p4)
}
 0x1d4   :  { %s309_s4 = scalar_lea.hbm %s429_s5, 16 }
 0x1d5   :  { %p310_p5 = scmp.ne.s32.totalorder %s429_s5, %s309_s4  ;;  %p313_p6 = scmp.lt.u32.totalorder %s309_s4, %s429_s5 }
 0x1d7   :  { %p315_p7 = pnand %p313_p6, %p310_p5 }
 0x1d9   :  { %318 = shalt.err (!%p315_p7)
}
 0x1da   :  { %208 = dma.vmem_to_hbm [thread:$0]  %s206_s30, 16, %s429_s5, [#allocation4]  }
 0x1db   :  { %319 = dma.done.wait [#allocation4], 16  }
 0x1dc   :  { %320 = vsyncadd [#allocation4], 4294967280 }
 0x1dd   :  { %212 = vsyncpa [#allocation4], 1 }

</bundles_post_ra>
